<compile_context>
chip_gen: v6e
topology: v6e:2x2x1
jax: 0.10.0
libtpu: 0.0.40
codegen_flags: <defaults>
</compile_context>

<pallas_src>
import functools

import jax
import jax.numpy as jnp
from jax import lax
from jax.experimental import pallas as pl
from jax.experimental.pallas import tpu as pltpu

_LANES = 128
_SUB_ROWS = 512  # rows per in-kernel reduction sub-chunk (bounds temp live ranges)


def _cdiv(a, b):
    return -(-a // b)


def _round_up(a, b):
    return _cdiv(a, b) * b


def _device_kind():
    try:
        return jax.devices()[0].device_kind.lower()
    except Exception:
        return ""


def _pick_sub_rows(rb):
    """Largest multiple-of-8 divisor of rb that is <= _SUB_ROWS."""
    if rb <= _SUB_ROWS:
        return rb
    if rb % _SUB_ROWS == 0:
        return _SUB_ROWS
    for cand in range(_SUB_ROWS - 8, 7, -8):
        if rb % cand == 0:
            return cand
    return 8  # rb is always a multiple of 8


def _kld_kernel(out_ref, tgt_ref, part_ref, *, log_target, steps, rb,
                sub_rows, valid_rows, need_mask):
    """Grid = (num_parallel, steps).

    out_ref / tgt_ref : (rb, 128) lane-dense tiles of the flattened inputs.
    part_ref          : (8, 128) f32 partial-sum accumulator for this parallel
                        slice; same output block across the inner "arbitrary"
                        axis, so it stays resident in VMEM.
    """
    p = pl.program_id(0)
    s = pl.program_id(1)

    @pl.when(s == 0)
    def _():
        part_ref[...] = jnp.zeros_like(part_ref)

    row_start = (p * steps + s) * rb  # logical (unclamped) first row of this tile
    n_sub = rb // sub_rows

    def tile_sum(t_raw, o_raw, roff):
        # Clamp before the branch, exactly as in the PyTorch module.
        t = jnp.maximum(t_raw.astype(jnp.float32), 1e-6)
        o = o_raw.astype(jnp.float32)
        if log_target:
            kld = jnp.exp(t) * (t - o)
        else:
            kld = t * (jnp.log(t) - o)
        if need_mask:
            # Mask rows past the end of the real data.  Applied AFTER
            # computing kld so any garbage/NaN in out-of-bounds sublanes is
            # selected away rather than accumulated.
            rid = roff + lax.broadcasted_iota(jnp.int32, kld.shape, 0)
            kld = jnp.where(rid < valid_rows, kld, 0.0)
        # Sublane-group VALU adds only (no cross-lane reduce in the kernel).
        return kld.reshape(-1, 8, _LANES).sum(axis=0)

    if n_sub == 1:
        acc = tile_sum(tgt_ref[...], out_ref[...], row_start)
    else:
        def chunk(c, acc):
            off = pl.multiple_of(c * sub_rows, 8)
            return acc + tile_sum(tgt_ref[pl.ds(off, sub_rows), :],
                                  out_ref[pl.ds(off, sub_rows), :],
                                  row_start + off)

        acc = lax.fori_loop(0, n_sub, chunk,
                            jnp.zeros((8, _LANES), jnp.float32), unroll=True)

    part_ref[...] += acc


def kl_div_loss(output, target, log_target=False, *,
                max_block_rows=None, num_parallel=None,
                vmem_budget_bytes=None):
    """Pallas implementation of KLDivLoss.forward.  Returns a float32 scalar."""
    if output.shape != target.shape:
        raise ValueError("output and target must have the same shape")
    b, t, h, w, bins = target.shape
    n_rows = b * t * h * w          # rows of the (N, bins) view (mean divisor)
    total = n_rows * bins           # total number of elements

    # ---- chip-aware defaults -------------------------------------------
    kind = _device_kind()
    is_v7 = ("v7" in kind) or ("7x" in kind)
    if num_parallel is None:
        num_parallel = 2 if is_v7 else 1           # 2 TCs only on v7x
    if vmem_budget_bytes is None:
        vmem_budget_bytes = (16 << 20) if is_v7 else (8 << 20)

    # ---- lane-dense (M, 128) view, zero-copy when possible --------------
    out_flat = output.reshape(-1)
    tgt_flat = target.reshape(-1)
    rem = total % _LANES
    if rem:
        # Rare path: pad to the next multiple of 128 with values whose kld is
        # exactly zero (t=1,o=0 -> 1*(log1-0)=0; t=1,o=1 -> e*(1-1)=0).
        # This is one extra copy; the common bins=16 / N%8==0 case avoids it.
        pad = _LANES - rem
        tgt_flat = jnp.pad(tgt_flat, (0, pad), constant_values=1.0)
        out_flat = jnp.pad(out_flat, (0, pad),
                           constant_values=(1.0 if log_target else 0.0))
    m = out_flat.size // _LANES     # rows of the lane-dense view (all valid)
    out2d = out_flat.reshape(m, _LANES)   # contiguous reshape -> no HBM copy
    tgt2d = tgt_flat.reshape(m, _LANES)

    # ---- tiling ----------------------------------------------------------
    itemsize = max(jnp.dtype(output.dtype).itemsize,
                   jnp.dtype(target.dtype).itemsize)
    if max_block_rows is None:
        # 2 inputs x 2 pipeline buffers of (rb, 128) tiles within the budget.
        max_block_rows = vmem_budget_bytes // (2 * 2 * _LANES * itemsize)
        max_block_rows = max(_SUB_ROWS, (max_block_rows // _SUB_ROWS) * _SUB_ROWS)
    max_block_rows = max(8, (max_block_rows // 8) * 8)

    num_parallel = max(1, min(num_parallel, _cdiv(m, 8)))  # don't over-split tiny inputs
    rows_per_slice = _cdiv(m, num_parallel)
    rb = min(max_block_rows, _round_up(rows_per_slice, 8))
    steps = _cdiv(rows_per_slice, rb)
    padded_m = num_parallel * steps * rb

    sub_rows = _pick_sub_rows(rb)
    need_mask = padded_m > m
    m_blocks = _cdiv(m, rb)

    kernel = functools.partial(
        _kld_kernel, log_target=log_target, steps=steps, rb=rb,
        sub_rows=sub_rows, valid_rows=m, need_mask=need_mask)

    def in_map(p, s):
        bi = p * steps + s
        # Clamp fully out-of-range trailing blocks (grid rounding) onto the
        # last real block; their contribution is masked to zero in-kernel.
        return (jnp.minimum(bi, m_blocks - 1), 0)

    partials = pl.pallas_call(
        kernel,
        out_shape=jax.ShapeDtypeStruct((num_parallel * 8, _LANES), jnp.float32),
        grid_spec=pltpu.PrefetchScalarGridSpec(
            num_scalar_prefetch=0,
            grid=(num_parallel, steps),
            in_specs=[
                pl.BlockSpec((rb, _LANES), in_map),   # output (log-probs)
                pl.BlockSpec((rb, _LANES), in_map),   # target (probs)
            ],
            out_specs=pl.BlockSpec((8, _LANES), lambda p, s: (p, 0)),
        ),
        compiler_params=pltpu.CompilerParams(
            # Outer axis: split rows across TensorCores (2x on v7x, harmless
            # elsewhere).  Inner axis: sequential reduction.
            dimension_semantics=("parallel", "arbitrary"),
            vmem_limit_bytes=int(vmem_budget_bytes + (8 << 20)),
        ),
    )(out2d, tgt2d)

    # Tiny final reduce + mean over the N rows of the original (N, bins) view.
    return partials.sum() / jnp.float32(n_rows)


def _reference(output, target, log_target=False):
    b, t, h, w, bins = target.shape
    n = b * t * h * w
    tgt = jnp.maximum(target.reshape(n, bins).astype(jnp.float32), 1e-6)
    out = output.reshape(n, bins).astype(jnp.float32)
    if log_target:
        kld = jnp.exp(tgt) * (tgt - out)
    else:
        kld = tgt * (jnp.log(tgt) - out)
    return kld.sum(-1).mean()


def _check(got, want, msg):
    assert jnp.allclose(got, want, rtol=1e-4, atol=1e-5), (msg, got, want)


if __name__ == "__main__":
    key = jax.random.PRNGKey(0)
    k1, k2, k3, k4 = jax.random.split(key, 4)

    # ---- Case A: (B,T,H,W,bins) with N*bins NOT a multiple of 128 --------
    # Exercises the rare pad path + in-kernel tail masking.
    B, T, H, W, BINS = 2, 3, 5, 5, 16
    target_a = jax.nn.softmax(jax.random.normal(k1, (B, T, H, W, BINS)), axis=-1)
    output_a = jax.nn.log_softmax(jax.random.normal(k2, (B, T, H, W, BINS)), axis=-1)
    ref_a = _reference(output_a, target_a, log_target=False)

    res = jax.block_until_ready(kl_div_loss(output_a, target_a, log_target=False))
    _check(res, ref_a, "case A default")

    # Tiny tiles: multiple inner grid steps -> exercises accumulation + mask.
    res = jax.block_until_ready(
        kl_div_loss(output_a, target_a, log_target=False, max_block_rows=8))
    _check(res, ref_a, "case A tiny tiles")

    # log_target=True branch (clamp-before-branch, as in the module).
    ref_a_log = _reference(output_a, target_a, log_target=True)
    res = jax.block_until_ready(kl_div_loss(output_a, target_a, log_target=True))
    _check(res, ref_a_log, "case A log_target")

    # ---- Case B: N*bins a multiple of 128 (zero-copy fast path) ----------
    # m = 1024 lane-rows; also exercises the sub-chunked in-kernel reduce.
    B, T, H, W, BINS = 2, 4, 32, 32, 16
    target_b = jax.nn.softmax(jax.random.normal(k3, (B, T, H, W, BINS)), axis=-1)
    output_b = jax.nn.log_softmax(jax.random.normal(k4, (B, T, H, W, BINS)), axis=-1)
    ref_b = _reference(output_b, target_b, log_target=False)

    res = jax.block_until_ready(kl_div_loss(output_b, target_b, log_target=False))
    _check(res, ref_b, "case B default")

    # Forced two parallel slices (v7x-style split) + small tiles on any chip.
    res = jax.block_until_ready(
        kl_div_loss(output_b, target_b, log_target=False,
                    num_parallel=2, max_block_rows=512))
    _check(res, ref_b, "case B parallel split")

    print("KERNEL_OK")
</pallas_src>

<mosaic_0001>
module attributes {stable_mosaic.version = 11 : i64} {
  func.func @_kld_kernel(%arg0: i32, %arg1: i32, %arg2: memref<24x128xf32, #tpu.memory_space<vmem>>, %arg3: memref<24x128xf32, #tpu.memory_space<vmem>>, %arg4: memref<8x128xf32, #tpu.memory_space<vmem>>) attributes {dimension_semantics = [#tpu.dimension_semantics<parallel>, #tpu.dimension_semantics<arbitrary>], iteration_bounds = array<i64: 1, 1>, scalar_prefetch = 0 : i64, scratch_operands = 0 : i64, tpu.core_type = #tpu.core_type<tc>, window_params = [{transform_indices = @transform_0, window_bounds = array<i64: 24, 128>}, {transform_indices = @transform_1, window_bounds = array<i64: 24, 128>}, {transform_indices = @transform_2, window_bounds = array<i64: 8, 128>}]} {
    %c0_i32 = arith.constant 0 : i32
    %0 = arith.cmpi eq, %arg1, %c0_i32 : i32
    %1 = arith.extui %0 : i1 to i32
    %c0_i32_0 = arith.constant 0 : i32
    %2 = arith.cmpi ne, %1, %c0_i32_0 : i32
    scf.if %2 {
      %cst_10 = arith.constant 0.000000e+00 : f32
      %25 = vector.broadcast %cst_10 : f32 to vector<8x128xf32>
      %c0_11 = arith.constant 0 : index
      %c0_12 = arith.constant 0 : index
      %26 = vector.load %arg4[%c0_11, %c0_12] : memref<8x128xf32, #tpu.memory_space<vmem>>, vector<8x128xf32>
      tpu.vector_store %arg4[%c0_11, %c0_12], %25 {strides = array<i32>} : memref<8x128xf32, #tpu.memory_space<vmem>>, vector<8x128xf32>,
    } else {
    }
    %c1_i32 = arith.constant 1 : i32
    %3 = arith.muli %arg0, %c1_i32 : i32
    %4 = arith.addi %3, %arg1 : i32
    %c24_i32 = arith.constant 24 : i32
    %5 = arith.muli %4, %c24_i32 : i32
    %c0 = arith.constant 0 : index
    %c0_1 = arith.constant 0 : index
    %6 = vector.load %arg3[%c0, %c0_1] : memref<24x128xf32, #tpu.memory_space<vmem>>, vector<24x128xf32>
    %c0_2 = arith.constant 0 : index
    %c0_3 = arith.constant 0 : index
    %7 = vector.load %arg2[%c0_2, %c0_3] : memref<24x128xf32, #tpu.memory_space<vmem>>, vector<24x128xf32>
    %cst = arith.constant 9.99999997E-7 : f32
    %8 = vector.broadcast %cst : f32 to vector<24x128xf32>
    %9 = arith.maximumf %6, %8 : vector<24x128xf32>
    %10 = math.log %9 : vector<24x128xf32>
    %11 = arith.subf %10, %7 : vector<24x128xf32>
    %12 = arith.mulf %9, %11 : vector<24x128xf32>
    %13 = tpu.iota {dimensions = array<i32: 0>} : vector<24x128xi32>
    %14 = vector.broadcast %5 : i32 to vector<24x128xi32>
    %15 = arith.addi %14, %13 : vector<24x128xi32>
    %c19_i32 = arith.constant 19 : i32
    %16 = vector.broadcast %c19_i32 : i32 to vector<24x128xi32>
    %17 = arith.cmpi slt, %15, %16 : vector<24x128xi32>
    %cst_4 = arith.constant 0.000000e+00 : f32
    %18 = vector.broadcast %cst_4 : f32 to vector<24x128xf32>
    %19 = arith.select %17, %12, %18 : vector<24x128xi1>, vector<24x128xf32>
    %20 = vector.shape_cast %19 : vector<24x128xf32> to vector<3x8x128xf32>
    %cst_5 = arith.constant dense<0.000000e+00> : vector<8x128xf32>
    %21 = vector.multi_reduction <add>, %20, %cst_5 [0] : vector<3x8x128xf32> to vector<8x128xf32>
    %c0_6 = arith.constant 0 : index
    %c0_7 = arith.constant 0 : index
    %22 = vector.load %arg4[%c0_6, %c0_7] : memref<8x128xf32, #tpu.memory_space<vmem>>, vector<8x128xf32>
    %23 = arith.addf %22, %21 : vector<8x128xf32>
    %c0_8 = arith.constant 0 : index
    %c0_9 = arith.constant 0 : index
    %24 = vector.load %arg4[%c0_8, %c0_9] : memref<8x128xf32, #tpu.memory_space<vmem>>, vector<8x128xf32>
    tpu.vector_store %arg4[%c0_8, %c0_9], %23 {strides = array<i32>} : memref<8x128xf32, #tpu.memory_space<vmem>>, vector<8x128xf32>,
    return
  }
  func.func @transform_0(%arg0: i32, %arg1: i32) -> (i32, i32) {
    %c1_i32 = arith.constant 1 : i32
    %0 = arith.muli %arg0, %c1_i32 : i32
    %1 = arith.addi %0, %arg1 : i32
    %c0_i32 = arith.constant 0 : i32
    %2 = arith.minsi %1, %c0_i32 : i32
    %c0_i32_0 = arith.constant 0 : i32
    %c0_i32_1 = arith.constant 0 : i32
    return %2, %c0_i32_0 : i32, i32
  }
  func.func @transform_1(%arg0: i32, %arg1: i32) -> (i32, i32) {
    %c1_i32 = arith.constant 1 : i32
    %0 = arith.muli %arg0, %c1_i32 : i32
    %1 = arith.addi %0, %arg1 : i32
    %c0_i32 = arith.constant 0 : i32
    %2 = arith.minsi %1, %c0_i32 : i32
    %c0_i32_0 = arith.constant 0 : i32
    %c0_i32_1 = arith.constant 0 : i32
    return %2, %c0_i32_0 : i32, i32
  }
  func.func @transform_2(%arg0: i32, %arg1: i32) -> (i32, i32) {
    %c0_i32 = arith.constant 0 : i32
    %c0_i32_0 = arith.constant 0 : i32
    return %arg0, %c0_i32 : i32, i32
  }
}

</mosaic_0001>

<bundles_post_ra>
// kernel: tpu_custom_call.1
= control target key start
LH: loop header
LB: loop body
LE: loop exit
PB: predicated region body
PF: predicated region fallthrough
CT: control target
= control target key end

     0   :  { %7 = vsyncpa [#allocation3], 0  ;;  %s234_s0 = inlined_call_operand.hbm [shape: f32[19,128], index: 0, kind: input, shape index: {}]   ;;  %s235_s1 = inlined_call_operand.hbm [shape: f32[19,128], index: 1, kind: input, shape index: {}]   ;;  %s236_s2 = inlined_call_operand.hbm [shape: f32[8,128], index: 2, kind: output, shape index: {}]  }
   0x1   :  { %8 = vsyncpa [#allocation6], 0 }
   0x2   :  { %9 = vsyncpa [#allocation4], 0  ;;  %s205_s9 = smov [#allocation2]  }
   0x3   :  { %s21_s10 = sshll.u32 %s205_s9, 4  ;;  %s22_s10 = int_to_ptr.vmem [resolvable:$true] %s21_s10 }
   0x4   :  { %s147_s11 = scalar_lea.vmem %s22_s10, 384  ;;  %p152_p1 = scmp.lt.s32.totalorder %s22_s10, %s22_s10 }
   0x5   :  { %p148_p0 = scmp.ne.s32.totalorder %s22_s10, %s147_s11  ;;  %p153_p2 = scmp.lt.s32.totalorder %s147_s11, %s147_s11 }
   0x7   :  { %p154_p3 = por %p153_p2, %p152_p1 }
   0x9   :  { %p155_p4 = pnand %p154_p3, %p148_p0 }
   0xb   :  { %158 = shalt.err (!%p155_p4)
}
   0xc   :  { %s206_s12 = smov 128   ;;  %s207_s13 = smov 8  }
   0xd   :  { %27 = dma.hbm_to_vmem [thread:$0]  %s234_s0, 384, %s22_s10, [#allocation3], %s206_s12, %s206_s12, %s207_s13  }
   0xe   :  { %s208_s16 = smov [#allocation5]  }
   0xf   :  { %s39_s17 = sshll.u32 %s208_s16, 4  ;;  %s40_s17 = int_to_ptr.vmem [resolvable:$true] %s39_s17 }
  0x10   :  { %s167_s18 = scalar_lea.vmem %s40_s17, 384  ;;  %p172_p6 = scmp.lt.s32.totalorder %s40_s17, %s40_s17 }
  0x11   :  { %p168_p5 = scmp.ne.s32.totalorder %s40_s17, %s167_s18  ;;  %p173_p7 = scmp.lt.s32.totalorder %s167_s18, %s167_s18 }
  0x13   :  { %p174_p8 = por %p173_p7, %p172_p6 }
  0x15   :  { %p175_p9 = pnand %p174_p8, %p168_p5 }
  0x17   :  { %178 = shalt.err (!%p175_p9)
}
  0x18   :  { %45 = dma.hbm_to_vmem [thread:$0]  %s235_s1, 384, %s40_s17, [#allocation6], %s206_s12, %s206_s12, %s207_s13  }
  0x19   :  { %199 = dma.done.wait [#allocation3], 384  }
  0x1a   :  { %200 = vsyncadd [#allocation3], 4294966912 }
  0x1b   :  { %201 = dma.done.wait [#allocation6], 384  }
  0x1c   :  { %202 = vsyncadd [#allocation6], 4294966912  ;;  %v67_v0 = vld [vmem:[#allocation5] sm:$0xff]  ;;  %v68_v1 = vld [vmem:[#allocation5 + $0x8] sm:$0xff]  ;;  %v88_v6 = vlaneseq  ;;  %s209_s0 = smov [#allocation7]  }
  0x1d   :  { %v69_v2 = vld [vmem:[#allocation5 + $0x10] sm:$0xff]  ;;  %v73_v3 = vmax.f32 %v67_v0, 1e-06  ;;  %v74_v4 = vmax.f32 %v68_v1, 1e-06  ;;  %v70_v9 = vld [vmem:[#allocation2] sm:$0xff] }
  0x1e   :  { %v75_v5 = vmax.f32 %v69_v2, 1e-06  ;;  %v89_v7 = vshrl.u32 %v88_v6, 7  ;;  %v71_v11 = vld [vmem:[#allocation2 + $0x8] sm:$0xff]  ;;  %v72_v14 = vld [vmem:[#allocation2 + $0x10] sm:$0xff]  ;;  %s113_s1 = sshll.u32 %s209_s0, 4  ;;  %s114_s1 = int_to_ptr.vmem [resolvable:$true] %s113_s1 }
  0x1f   :  { %133 = vlog2.f32 %v73_v3  ;;  %s179_s21 = scalar_lea.vmem %s114_s1, 128  ;;  %p184_p11 = scmp.lt.s32.totalorder %s114_s1, %s114_s1 }
  0x20   :  { %135 = vlog2.f32 %v74_v4  ;;  %v91_v16 = vadd.s32 16, %v89_v7  ;;  %p180_p10 = scmp.ne.s32.totalorder %s114_s1, %s179_s21  ;;  %p185_p12 = scmp.lt.s32.totalorder %s179_s21, %s179_s21 }
  0x21   :  { %137 = vlog2.f32 %v75_v5 }
  0x22   :  { %vm98_vm0 = vcmp.lt.s32.totalorder %v91_v16, 19  ;;  %p186_p13 = por %p185_p12, %p184_p11 }
  0x24   :  { %p187_p0 = pnand %p186_p13, %p180_p10 }
  0x2c   :  { %v134_v8 = vpop.eup %133 }
  0x2d   :  { %v136_v10 = vpop.eup %135  ;;  %v77_v12 = vmul.f32 0.6931472, %v134_v8 }
  0x2e   :  { %v138_v13 = vpop.eup %137  ;;  %v79_v15 = vmul.f32 0.6931472, %v136_v10 }
  0x2f   :  { %v81_v17 = vmul.f32 0.6931472, %v138_v13  ;;  %v82_v18 = vsub.f32 %v77_v12, %v70_v9 }
  0x30   :  { %v83_v19 = vsub.f32 %v79_v15, %v71_v11 }
  0x31   :  { %v84_v20 = vsub.f32 %v81_v17, %v72_v14  ;;  %v85_v21 = vmul.f32 %v82_v18, %v73_v3 }
  0x32   :  { %v86_v22 = vmul.f32 %v83_v19, %v74_v4 }
  0x33   :  { %v87_v23 = vmul.f32 %v84_v20, %v75_v5 }
  0x34   :  { %v102_v24 = vadd.f32 %v86_v22, %v85_v21 }
  0x35   :  { %v101_v25 = vsel %vm98_vm0, %v87_v23, 0.0 }
  0x36   :  { %v103_v26 = vadd.f32 %v102_v24, %v101_v25 }
  0x38   :  { %106 = vst [vmem:[#allocation7] sm:$0xff] %v103_v26 }
  0x39   :  { %190 = shalt.err (!%p187_p0)
}
  0x3a   :  { %116 = dma.vmem_to_hbm [thread:$0]  %s114_s1, 128, %s236_s2, [#allocation4]  }
  0x3b   :  { %203 = dma.done.wait [#allocation4], 128  }
  0x3c   :  { %204 = vsyncadd [#allocation4], 4294967168 }
  0x3d   :  { %120 = vsyncpa [#allocation3], 1 }
  0x3e   :  { %121 = vsyncpa [#allocation6], 1 }
  0x3f   :  { %122 = vsyncpa [#allocation4], 1 }

</bundles_post_ra>
